<compile_context>
chip_gen: v6e
topology: v6e:2x2x1
jax: 0.10.0
libtpu: 0.0.40
codegen_flags: <defaults>
</compile_context>

<pallas_src>
import functools

import jax
import jax.numpy as jnp
from jax import lax
from jax.experimental import pallas as pl
from jax.experimental.pallas import tpu as pltpu


def _attention_kernel(x_ref, wqkv_ref, bqkv_ref, out_ref, attn_ref,
                      q_scr, k_scr, v_scr, *, scale, q_tile, d_att,
                      compute_dtype):
    """One (batch, query-tile) grid step.

    x_ref    : (1, S, D_in)     full sequence of this batch (resident across qi)
    wqkv_ref : (D_in, 3*D_att)  fused Q/K/V projection weight
    bqkv_ref : (1, 3*D_att)     fused bias
    out_ref  : (1, TQ, D_att)
    attn_ref : (1, TQ, S)
    q/k/v_scr: (S, D_att)       per-batch projections, written once at qi == 0
    """
    qi = pl.program_id(1)
    cdt = compute_dtype

    # ---- per-batch phase: fused QKV projection, hoisted out of the qi loop ----
    @pl.when(qi == 0)
    def _():
        x_full = x_ref[0].astype(cdt)                        # (S, D_in)
        w = wqkv_ref[...].astype(cdt)                        # (D_in, 3*D_att)
        # One MXU stream; f32 accumulation; bias add in f32.
        qkv = jnp.dot(x_full, w, preferred_element_type=jnp.float32)
        qkv = qkv + bqkv_ref[...]                            # (S, 3*D_att)
        # Fold the softmax scale into Q once per batch (S x D_att multiply).
        q_scr[...] = (qkv[:, :d_att] * scale).astype(cdt)
        k_scr[...] = qkv[:, d_att:2 * d_att].astype(cdt)
        v_scr[...] = qkv[:, 2 * d_att:].astype(cdt)

    # ---- per-query-tile phase ----
    row0 = pl.multiple_of(qi * q_tile, q_tile)
    q = q_scr[pl.ds(row0, q_tile), :]                        # (TQ, D_att)
    k = k_scr[...]                                           # (S,  D_att)

    # scores = Q @ K^T without materializing K^T: contract the last dim of
    # both operands so the MXU consumes K as-is (no XLU transpose).
    scores = lax.dot_general(q, k, (((1,), (1,)), ((), ())),
                             preferred_element_type=jnp.float32)   # (TQ, S)

    # Numerically-stable softmax over keys, all in f32 (VPU/EUP).
    m = jnp.max(scores, axis=-1, keepdims=True)
    e = jnp.exp(scores - m)
    denom = jnp.sum(e, axis=-1, keepdims=True)               # (TQ, 1)
    # Exact reciprocal on the tiny (TQ, 1) denominator (negligible cost, keeps
    # the returned weights identical to softmax); broadcast multiply replaces
    # an S-wide division.
    attn = e * pl.reciprocal(denom, approx=False)            # (TQ, S), f32

    out = jnp.dot(attn.astype(cdt), v_scr[...],
                  preferred_element_type=jnp.float32)        # (TQ, D_att)

    out_ref[0] = out.astype(out_ref.dtype)
    attn_ref[0] = attn.astype(attn_ref.dtype)


def attention_pallas(x, wq, wk, wv, bq, bk, bv, attention_dim,
                     *, q_tile=None, compute_dtype=None,
                     attn_dtype=jnp.float32):
    """x: (B, S, D_in); weights (D_in, D_att); biases (1, D_att).

    compute_dtype: optional MXU operand dtype (e.g. jnp.bfloat16 on v5e/v6e/
    v7x for MXU peak); accumulation and softmax stay in f32 regardless.
    attn_dtype: dtype of the returned attention weights (f32 by default;
    bf16 halves the dominant (B, S, S) HBM writeback when tolerable).
    """
    B, S, D_in = x.shape
    D_att = attention_dim
    scale = float(D_att) ** -0.5
    cdt = jnp.dtype(compute_dtype) if compute_dtype is not None else jnp.dtype(x.dtype)

    if q_tile is None:
        # 256 fills the 2x256^2 MXU on v6e/v7x; prefer 128 on v5e (4x128^2).
        q_tile = min(S, 256)
    q_tile = min(q_tile, S)
    assert S % q_tile == 0, "S must be a multiple of q_tile (pad upstream otherwise)"
    num_q_tiles = S // q_tile

    # Fuse Q/K/V parameters: one wide projection per batch instead of three
    # narrow ones (full MXU column utilization when D_att < 128/256).
    w_qkv = jnp.concatenate([wq, wk, wv], axis=1)            # (D_in, 3*D_att)
    b_qkv = jnp.concatenate([bq, bk, bv], axis=1)            # (1, 3*D_att)

    kernel = functools.partial(_attention_kernel, scale=scale, q_tile=q_tile,
                               d_att=D_att, compute_dtype=cdt)

    # VMEM budget: double-buffered blocks + fused weights + persistent Q/K/V
    # scratch + in-kernel f32 temps, with headroom, clamped per generation.
    isz_x = jnp.dtype(x.dtype).itemsize
    isz_c = jnp.dtype(cdt).itemsize
    isz_a = jnp.dtype(attn_dtype).itemsize
    isz_w = jnp.dtype(w_qkv.dtype).itemsize
    blocks = 2 * (S * D_in * isz_x               # x block
                  + q_tile * D_att * isz_x       # out block
                  + q_tile * S * isz_a)          # attn block (attn itemsize)
    weights = 2 * (D_in * 3 * D_att + 3 * D_att) * isz_w
    scratch = 3 * S * D_att * isz_c              # persistent Q/K/V projections
    temps = (S * 3 * D_att * 4                   # fused projection result (f32)
             + 3 * q_tile * S * 4                # scores / e / attn (f32)
             + 2 * q_tile * D_att * 4)           # PV output temps (f32)
    need = blocks + weights + scratch + temps
    try:
        vmem_cap = int(pltpu.get_tpu_info().vmem_capacity_bytes)
    except Exception:  # be conservative if the query is unavailable
        vmem_cap = 64 << 20
    vmem_clamp = max(vmem_cap - (16 << 20), 32 << 20)   # ~112 MiB v5e/v6e, ~48 MiB v7x
    vmem_limit = int(min(max(int(1.5 * need), 4 << 20), vmem_clamp))

    grid_spec = pltpu.PrefetchScalarGridSpec(
        num_scalar_prefetch=0,
        grid=(B, num_q_tiles),
        in_specs=[
            # Full sequence of this batch; block index ignores qi so the tile
            # stays resident in VMEM across all query tiles of the batch.
            pl.BlockSpec((1, S, D_in), lambda b, qi: (b, 0, 0)),        # x
            pl.BlockSpec((D_in, 3 * D_att), lambda b, qi: (0, 0)),      # W_qkv
            pl.BlockSpec((1, 3 * D_att), lambda b, qi: (0, 0)),         # b_qkv
        ],
        out_specs=[
            pl.BlockSpec((1, q_tile, D_att), lambda b, qi: (b, qi, 0)),  # out
            pl.BlockSpec((1, q_tile, S), lambda b, qi: (b, qi, 0)),      # attn
        ],
        scratch_shapes=[
            pltpu.VMEM((S, D_att), cdt),   # Q (pre-scaled), per batch
            pltpu.VMEM((S, D_att), cdt),   # K, per batch
            pltpu.VMEM((S, D_att), cdt),   # V, per batch
        ],
    )

    out, attn = pl.pallas_call(
        kernel,
        out_shape=(
            jax.ShapeDtypeStruct((B, S, D_att), x.dtype),
            jax.ShapeDtypeStruct((B, S, S), attn_dtype),
        ),
        grid_spec=grid_spec,
        compiler_params=pltpu.CompilerParams(
            # qi carries the Q/K/V scratch across query tiles -> "arbitrary";
            # batches are independent -> "parallel" (megacore sharding).
            dimension_semantics=("parallel", "arbitrary"),
            vmem_limit_bytes=vmem_limit),
    )(x, w_qkv, b_qkv)
    return out, attn


def attention_ref(x, wq, wk, wv, bq, bk, bv, attention_dim):
    scale = float(attention_dim) ** -0.5
    q = x @ wq + bq[0]
    k = x @ wk + bk[0]
    v = x @ wv + bv[0]
    scores = jnp.einsum("bqd,bkd->bqk", q, k) * scale
    attn = jax.nn.softmax(scores, axis=-1)
    out = jnp.einsum("bqk,bkd->bqd", attn, v)
    return out, attn


if __name__ == "__main__":
    # Small but lane-dense, tiling-exercising shapes: D_att and S are
    # multiples of 128 so both output blocks store unmasked; grid = (2, 4).
    B, S, input_dim, attention_dim = 2, 128, 64, 128
    Q_TILE = 32

    key = jax.random.PRNGKey(0)
    kx, kq, kk, kv, kbq, kbk, kbv = jax.random.split(key, 7)

    x = jax.random.normal(kx, (B, S, input_dim), dtype=jnp.float32)
    # Deterministic synthetic parameters (shapes match nn.Linear(input_dim, attention_dim))
    wq = jax.random.normal(kq, (input_dim, attention_dim), dtype=jnp.float32) * 0.1
    wk = jax.random.normal(kk, (input_dim, attention_dim), dtype=jnp.float32) * 0.1
    wv = jax.random.normal(kv, (input_dim, attention_dim), dtype=jnp.float32) * 0.1
    bq = jax.random.normal(kbq, (1, attention_dim), dtype=jnp.float32) * 0.1
    bk = jax.random.normal(kbk, (1, attention_dim), dtype=jnp.float32) * 0.1
    bv = jax.random.normal(kbv, (1, attention_dim), dtype=jnp.float32) * 0.1

    # f32 compute in the demo for a tight parity check; pass
    # compute_dtype=jnp.bfloat16 in production for v5e/v6e/v7x MXU peak.
    out, attn = attention_pallas(x, wq, wk, wv, bq, bk, bv, attention_dim,
                                 q_tile=Q_TILE, compute_dtype=None)
    out, attn = jax.block_until_ready((out, attn))

    out_r, attn_r = attention_ref(x, wq, wk, wv, bq, bk, bv, attention_dim)
    assert jnp.allclose(out, out_r, atol=2e-3, rtol=2e-3)
    assert jnp.allclose(attn, attn_r, atol=2e-3, rtol=2e-3)

    print("KERNEL_OK")
</pallas_src>

<mosaic_0001>
module attributes {stable_mosaic.version = 11 : i64} {
  func.func @_attention_kernel(%arg0: i32, %arg1: i32, %arg2: memref<1x128x64xf32, #tpu.memory_space<vmem>>, %arg3: memref<64x384xf32, #tpu.memory_space<vmem>>, %arg4: memref<1x384xf32, #tpu.memory_space<vmem>>, %arg5: memref<1x32x128xf32, #tpu.memory_space<vmem>>, %arg6: memref<1x32x128xf32, #tpu.memory_space<vmem>>, %arg7: memref<128x128xf32, #tpu.memory_space<vmem>>, %arg8: memref<128x128xf32, #tpu.memory_space<vmem>>, %arg9: memref<128x128xf32, #tpu.memory_space<vmem>>) attributes {dimension_semantics = [#tpu.dimension_semantics<parallel>, #tpu.dimension_semantics<arbitrary>], iteration_bounds = array<i64: 2, 4>, scalar_prefetch = 0 : i64, scratch_operands = 3 : i64, tpu.core_type = #tpu.core_type<tc>, window_params = [{transform_indices = @transform_0, window_bounds = array<i64: 1, 128, 64>}, {pipeline_mode = #tpu.pipeline_mode<synchronous>, transform_indices = @transform_1, window_bounds = array<i64: 64, 384>}, {pipeline_mode = #tpu.pipeline_mode<synchronous>, transform_indices = @transform_2, window_bounds = array<i64: 1, 384>}, {transform_indices = @transform_3, window_bounds = array<i64: 1, 32, 128>}, {transform_indices = @transform_4, window_bounds = array<i64: 1, 32, 128>}]} {
    %c0_i32 = arith.constant 0 : i32
    %0 = arith.cmpi eq, %arg1, %c0_i32 : i32
    %1 = arith.extui %0 : i1 to i32
    %c0_i32_0 = arith.constant 0 : i32
    %2 = arith.cmpi ne, %1, %c0_i32_0 : i32
    scf.if %2 {
      %c0_14 = arith.constant 0 : index
      %c0_15 = arith.constant 0 : index
      %c0_16 = arith.constant 0 : index
      %27 = vector.load %arg2[%c0_14, %c0_15, %c0_16] : memref<1x128x64xf32, #tpu.memory_space<vmem>>, vector<1x128x64xf32>
      %28 = vector.shape_cast %27 : vector<1x128x64xf32> to vector<128x64xf32>
      %c0_17 = arith.constant 0 : index
      %c0_18 = arith.constant 0 : index
      %29 = vector.load %arg3[%c0_17, %c0_18] : memref<64x384xf32, #tpu.memory_space<vmem>>, vector<64x384xf32>
      %cst_19 = arith.constant dense<0.000000e+00> : vector<128x384xf32>
      %30 = tpu.matmul %28, %29, %cst_19 {dimension_numbers = #tpu.dot_dimension_numbers<[1], [0], [0], [1], [0, 0, 1, 1], [], []>} : vector<128x64xf32>, vector<64x384xf32>, vector<128x384xf32> -> vector<128x384xf32>
      %c0_20 = arith.constant 0 : index
      %c0_21 = arith.constant 0 : index
      %31 = vector.load %arg4[%c0_20, %c0_21] : memref<1x384xf32, #tpu.memory_space<vmem>>, vector<1x384xf32>
      %32 = vector.broadcast %31 : vector<1x384xf32> to vector<128x384xf32>
      %33 = arith.addf %30, %32 : vector<128x384xf32>
      %34 = vector.extract_strided_slice %33 {offsets = [0, 0], sizes = [128, 128], strides = [1, 1]} : vector<128x384xf32> to vector<128x128xf32>
      %cst_22 = arith.constant 0.0883883461 : f32
      %35 = vector.broadcast %cst_22 : f32 to vector<128x128xf32>
      %36 = arith.mulf %34, %35 : vector<128x128xf32>
      %c0_23 = arith.constant 0 : index
      %c0_24 = arith.constant 0 : index
      %37 = vector.load %arg7[%c0_23, %c0_24] : memref<128x128xf32, #tpu.memory_space<vmem>>, vector<128x128xf32>
      tpu.vector_store %arg7[%c0_23, %c0_24], %36 {strides = array<i32>} : memref<128x128xf32, #tpu.memory_space<vmem>>, vector<128x128xf32>,
      %38 = vector.extract_strided_slice %33 {offsets = [0, 128], sizes = [128, 128], strides = [1, 1]} : vector<128x384xf32> to vector<128x128xf32>
      %c0_25 = arith.constant 0 : index
      %c0_26 = arith.constant 0 : index
      %39 = vector.load %arg8[%c0_25, %c0_26] : memref<128x128xf32, #tpu.memory_space<vmem>>, vector<128x128xf32>
      tpu.vector_store %arg8[%c0_25, %c0_26], %38 {strides = array<i32>} : memref<128x128xf32, #tpu.memory_space<vmem>>, vector<128x128xf32>,
      %40 = vector.extract_strided_slice %33 {offsets = [0, 256], sizes = [128, 128], strides = [1, 1]} : vector<128x384xf32> to vector<128x128xf32>
      %c0_27 = arith.constant 0 : index
      %c0_28 = arith.constant 0 : index
      %41 = vector.load %arg9[%c0_27, %c0_28] : memref<128x128xf32, #tpu.memory_space<vmem>>, vector<128x128xf32>
      tpu.vector_store %arg9[%c0_27, %c0_28], %40 {strides = array<i32>} : memref<128x128xf32, #tpu.memory_space<vmem>>, vector<128x128xf32>,
    } else {
    }
    %c32_i32 = arith.constant 32 : i32
    %3 = arith.muli %arg1, %c32_i32 : i32
    %4 = tpu.assume_multiple %3, 32 : i32
    %5 = arith.index_cast %4 : i32 to index
    %c0 = arith.constant 0 : index
    %6 = vector.load %arg7[%5, %c0] : memref<128x128xf32, #tpu.memory_space<vmem>>, vector<32x128xf32>
    %c0_1 = arith.constant 0 : index
    %c0_2 = arith.constant 0 : index
    %7 = vector.load %arg8[%c0_1, %c0_2] : memref<128x128xf32, #tpu.memory_space<vmem>>, vector<128x128xf32>
    %cst = arith.constant dense<0.000000e+00> : vector<32x128xf32>
    %8 = tpu.matmul %6, %7, %cst {dimension_numbers = #tpu.dot_dimension_numbers<[1], [1], [0], [0], [0, 0, 1, 0], [], []>} : vector<32x128xf32>, vector<128x128xf32>, vector<32x128xf32> -> vector<32x128xf32>
    %cst_3 = arith.constant dense<0xFF800000> : vector<32xf32>
    %9 = vector.multi_reduction <maximumf>, %8, %cst_3 [1] : vector<32x128xf32> to vector<32xf32>
    %10 = vector.shape_cast %9 : vector<32xf32> to vector<32x1xf32>
    %11 = vector.broadcast %10 : vector<32x1xf32> to vector<32x128xf32>
    %12 = arith.subf %8, %11 : vector<32x128xf32>
    %13 = math.exp %12 : vector<32x128xf32>
    %cst_4 = arith.constant dense<0.000000e+00> : vector<32xf32>
    %14 = vector.multi_reduction <add>, %13, %cst_4 [1] : vector<32x128xf32> to vector<32xf32>
    %15 = vector.shape_cast %14 : vector<32xf32> to vector<32x1xf32>
    %16 = tpu.reciprocal %15 : vector<32x1xf32> -> vector<32x1xf32>
    %17 = vector.broadcast %16 : vector<32x1xf32> to vector<32x128xf32>
    %18 = arith.mulf %13, %17 : vector<32x128xf32>
    %c0_5 = arith.constant 0 : index
    %c0_6 = arith.constant 0 : index
    %19 = vector.load %arg9[%c0_5, %c0_6] : memref<128x128xf32, #tpu.memory_space<vmem>>, vector<128x128xf32>
    %cst_7 = arith.constant dense<0.000000e+00> : vector<32x128xf32>
    %20 = tpu.matmul %18, %19, %cst_7 {dimension_numbers = #tpu.dot_dimension_numbers<[1], [0], [0], [1], [0, 0, 1, 1], [], []>} : vector<32x128xf32>, vector<128x128xf32>, vector<32x128xf32> -> vector<32x128xf32>
    %c0_8 = arith.constant 0 : index
    %c0_9 = arith.constant 0 : index
    %c0_10 = arith.constant 0 : index
    %21 = vector.load %arg5[%c0_8, %c0_9, %c0_10] : memref<1x32x128xf32, #tpu.memory_space<vmem>>, vector<1x32x128xf32>
    %22 = vector.shape_cast %21 : vector<1x32x128xf32> to vector<32x128xf32>
    %23 = vector.shape_cast %20 : vector<32x128xf32> to vector<1x32x128xf32>
    tpu.vector_store %arg5[%c0_8, %c0_9, %c0_10], %23 {strides = array<i32>} : memref<1x32x128xf32, #tpu.memory_space<vmem>>, vector<1x32x128xf32>,
    %c0_11 = arith.constant 0 : index
    %c0_12 = arith.constant 0 : index
    %c0_13 = arith.constant 0 : index
    %24 = vector.load %arg6[%c0_11, %c0_12, %c0_13] : memref<1x32x128xf32, #tpu.memory_space<vmem>>, vector<1x32x128xf32>
    %25 = vector.shape_cast %24 : vector<1x32x128xf32> to vector<32x128xf32>
    %26 = vector.shape_cast %18 : vector<32x128xf32> to vector<1x32x128xf32>
    tpu.vector_store %arg6[%c0_11, %c0_12, %c0_13], %26 {strides = array<i32>} : memref<1x32x128xf32, #tpu.memory_space<vmem>>, vector<1x32x128xf32>,
    return
  }
  func.func @transform_0(%arg0: i32, %arg1: i32) -> (i32, i32, i32) {
    %c0_i32 = arith.constant 0 : i32
    %c0_i32_0 = arith.constant 0 : i32
    %c0_i32_1 = arith.constant 0 : i32
    return %arg0, %c0_i32, %c0_i32_0 : i32, i32, i32
  }
  func.func @transform_1(%arg0: i32, %arg1: i32) -> (i32, i32) {
    %c0_i32 = arith.constant 0 : i32
    %c0_i32_0 = arith.constant 0 : i32
    %c0_i32_1 = arith.constant 0 : i32
    return %c0_i32, %c0_i32_0 : i32, i32
  }
  func.func @transform_2(%arg0: i32, %arg1: i32) -> (i32, i32) {
    %c0_i32 = arith.constant 0 : i32
    %c0_i32_0 = arith.constant 0 : i32
    %c0_i32_1 = arith.constant 0 : i32
    return %c0_i32, %c0_i32_0 : i32, i32
  }
  func.func @transform_3(%arg0: i32, %arg1: i32) -> (i32, i32, i32) {
    %c0_i32 = arith.constant 0 : i32
    %c0_i32_0 = arith.constant 0 : i32
    return %arg0, %arg1, %c0_i32 : i32, i32, i32
  }
  func.func @transform_4(%arg0: i32, %arg1: i32) -> (i32, i32, i32) {
    %c0_i32 = arith.constant 0 : i32
    %c0_i32_0 = arith.constant 0 : i32
    return %arg0, %arg1, %c0_i32 : i32, i32, i32
  }
}

</mosaic_0001>

<bundles_post_ra>
// kernel: tpu_custom_call.1
= control target key start
LH: loop header
LB: loop body
LE: loop exit
PB: predicated region body
PF: predicated region fallthrough
CT: control target
= control target key end

     0   :  { %10 = vsyncpa [#allocation6], 0  ;;  %s2014_s0 = inlined_call_operand.vmem [shape: f32[2,128,64], index: 0, kind: input, shape index: {}]   ;;  %s2015_s1 = inlined_call_operand.vmem [shape: f32[64,384], index: 1, kind: input, shape index: {}]   ;;  %s2016_s2 = inlined_call_operand.vmem [shape: f32[1,384], index: 2, kind: input, shape index: {}]   ;;  %s2017_s3 = inlined_call_operand.hbm [shape: f32[2,128,128], index: 3, kind: output, shape index: {0}]   ;;  %s2018_s4 = inlined_call_operand.hbm [shape: f32[2,128,128], index: 4, kind: output, shape index: {1}]  }
   0x1   :  { %12 = vsyncpa [#allocation6 + $0x1], 0 }
   0x2   :  { %13 = vsyncpa [#allocation8], 0 }
   0x3   :  { %15 = vsyncpa [#allocation8 + $0x1], 0  ;;  %s1608_s15 = smov 0   ;;  %s1610_s16 = smov 0  }
   0x4   :  { %s1612_s17 = smov 0   ;;  %s1614_s18 = smov 0  }
   0x5   :  { %s1616_s19 = smov 0   ;;  %s1618_s20 = smov 0  }
   0x6   :  { %s1620_s21 = smov 0   ;;  %s1622_s22 = smov 0  }
   0x7 LB: > { %s1109_s23 = sadd.s32 4294967295, %s1576_s22   ;;  %s1110_s24 = sadd.s32 4294967294, %s1576_s22   ;;  %s1576_s22 = sphi %s1622_s22, %s21_s22   ;;  %s1572_s21 = sphi %s1620_s21, %s2030_s21   ;;  %s1568_s20 = sphi %s1618_s20, %s2029_s20   ;;  %s1564_s19 = sphi %s1616_s19, %s2028_s19   ;;  %s1560_s18 = sphi %s1614_s18, %s2027_s18   ;;  %s1556_s17 = sphi %s1612_s17, %s2026_s17   ;;  %s1552_s16 = sphi %s1610_s16, %s2025_s16   ;;  %s1548_s15 = sphi %s1608_s15, %s2024_s15  }
   0x8   : > { %s30_s25 = sadd.s32 1, %s1568_s20  ;;  %s33_s26 = sadd.s32 1, %s1572_s21 }
   0x9   : > { %p31_p0 = scmp.ge.s32.totalorder %s30_s25, 4  ;;  %p120_p1 = scmp.ne.s32.totalorder %s1556_s17, %s1552_s16 }
   0xa   : > { %p121_p2 = scmp.eq.s32.totalorder %s1109_s23, 7  ;;  %p126_p5 = scmp.ne.s32.totalorder %s1552_s16, %s1548_s15 }
   0xb   : > { %s2032_s25 = smov (%p31_p0, %s30_s25), 0  ;;  %s2034_s26 = smov (!%p31_p0, %s33_s26), %s1572_s21 }
   0xc   : > { %s106_s27 = ssub.s32 %s1568_s20, %s2032_s25  ;;  %p1659_p3 = por %p121_p2, %p120_p1 }
   0xd   : > { %p35_p4 = scmp.ge.s32.totalorder %s2034_s26, 2  ;;  %p127_p6 = scmp.eq.s32.totalorder %s1110_s24, 7 }
   0xe   : > { %p1113_p7 = scmp.ge.s32.totalorder %s1576_s22, 1  ;;  %p187_p9 = scmp.lt.s32.totalorder %s1576_s22, 9 }
   0xf   : > { %s2036_s26 = smov (%p35_p4, %s2034_s26), 0  ;;  %p1668_p8 = por %p127_p6, %p126_p5 }
  0x10   : > { %2021 = sst [smem:[#allocation11_spill]] %s2036_s26  ;;  %s105_s30 = ssub.s32 %s1572_s21, %s2036_s26 }
  0x11   : > { %s110_s5 = sadd.s32 1, %s1556_s17  ;;  %s107_s6 = sor.u32 %s106_s27, %s105_s30 }
  0x12   : > { %p188_p10 = pnand %p1113_p7, %p187_p9  ;;  %p108_p11 = scmp.eq.s32.totalorder %s107_s6, 0 }
  0x13   : > { %s1680_s8 = sand.u32 (!%p188_p10), 1, %s1552_s16   ;;  %p218_p12 = scmp.lt.s32.totalorder (!%p188_p10), %s1564_s19, 1 }
  0x14   : > { %s1677_s7 = scalar_select %p108_p11, %s1556_s17, %s110_s5  }
  0x15   : > { %191 = sbr.rel (%p188_p10) target bundleno = 1079 (0x437), region = 32  ;;  %s1114_s9 = sshll.u32 (!%p188_p10), %s1680_s8, 5 }
  0x16   : > { %s1690_s23 = scalar_lea.vmem (!%p188_p10), [#allocation5], %s1114_s9  ;;  %s1692_s24 = scalar_lea.vmem (!%p188_p10), [#allocation7], %s1114_s9 }
  0x17   : > { %p1118_p13 = scmp.ne.s32.totalorder (!%p188_p10), %s1560_s18, 0 }
  0x1a   : > { %s219_s10 = scalar_select %p218_p12, %s1564_s19, 1 }
  0x1b   : > { %228 = sbr.rel (%p1118_p13) target bundleno = 293 (0x125), region = 36 }
  0x1c   : > { %s1162_s11 = sshll.u32 %s219_s10, 7 }
  0x1d   : > { %s1688_s14 = scalar_lea.vmem %s2014_s0, %s1162_s11 }
  0x20   : > { %v267_v0 = vld [vmem:[%s2015_s1 + $0xb0] sm:$0xff]  ;;  %v266_v1 = vld [vmem:[%s2015_s1 + $0xa8] sm:$0xff]  ;;  %v264_v2 = vld [vmem:[%s2015_s1 + $0x98] sm:$0xff]  ;;  %vm286_vm0 = vcmask 523264   ;;  %v1578_v19 = vmov 0.0   ;;  %v271_v41 = vlaneseq }
  0x21   : > { %351 = vmatprep.subr.mxu0 %v267_v0  ;;  %1343 = vmatprep.subr.mxu1 %v267_v0  ;;  %v263_v3 = vld [vmem:[%s2015_s1 + $0x90] sm:$0xff]  ;;  %v261_v4 = vld [vmem:[%s2015_s1 + $0x80] sm:$0xff]  ;;  %v260_v5 = vld [vmem:[%s2015_s1 + $0x78] sm:$0xff] }
  0x22   : > { %352 = vmatpush1.msra.mxu0 %v266_v1  ;;  %1351 = vmatpush1.msra.mxu1 %v266_v1  ;;  %v258_v6 = vld [vmem:[%s2015_s1 + $0x68] sm:$0xff]  ;;  %v257_v7 = vld [vmem:[%s2015_s1 + $0x60] sm:$0xff]  ;;  %v255_v8 = vld [vmem:[%s2015_s1 + $0x50] sm:$0xff]  ;;  %v272_v42 = vshrl.u32 %v271_v41, 7 }
  0x23   : > { %353 = vmatprep.subr.mxu0 %v264_v2  ;;  %1344 = vmatprep.subr.mxu1 %v264_v2  ;;  %v254_v9 = vld [vmem:[%s2015_s1 + $0x48] sm:$0xff]  ;;  %v252_v10 = vld [vmem:[%s2015_s1 + $0x38] sm:$0xff]  ;;  %v251_v11 = vld [vmem:[%s2015_s1 + $0x30] sm:$0xff] }
  0x24   : > { %354 = vmatpush1.msra.mxu0 %v263_v3  ;;  %1352 = vmatpush1.msra.mxu1 %v263_v3  ;;  %v249_v12 = vld [vmem:[%s2015_s1 + $0x20] sm:$0xff]  ;;  %v248_v13 = vld [vmem:[%s2015_s1 + $0x18] sm:$0xff]  ;;  %v246_v14 = vld [vmem:[%s2015_s1 + $0x8] sm:$0xff]  ;;  %v273_v43 = vsub.s32 0, %v272_v42  ;;  %v277_v45 = vsub.s32 1, %v272_v42 }
  0x25   : > { %355 = vmatprep.subr.mxu0 %v261_v4  ;;  %1345 = vmatprep.subr.mxu1 %v261_v4  ;;  %v245_v15 = vld [vmem:[%s2015_s1] sm:$0xff]  ;;  %v268_v18 = vld [vmem:[%s2015_s1 + $0xb8] sm:$0xff]  ;;  %v230_v21 = vld [vmem:[%s1688_s14 + $0x8] sm:$0xff] }
  0x26   : > { %356 = vmatpush1.msra.mxu0 %v260_v5  ;;  %1353 = vmatpush1.msra.mxu1 %v260_v5  ;;  %v229_v16 = vld [vmem:[%s1688_s14] sm:$0xff]  ;;  %v1762_v22 = vld [vmem:[%s1688_s14 + $0x68] sm:$0xff]  ;;  %v259_v24 = vld [vmem:[%s2015_s1 + $0x70] sm:$0xff] }
  0x27   : > { %357 = vmatprep.subr.mxu0 %v258_v6  ;;  %1346 = vmatprep.subr.mxu1 %v258_v6  ;;  %v1745_v17 = vld [vmem:[%s1688_s14 + $0x60] sm:$0xff]  ;;  %v262_v23 = vld [vmem:[%s2015_s1 + $0x88] sm:$0xff]  ;;  %v231_v25 = vld [vmem:[%s1688_s14 + $0x10] sm:$0xff] }
  0x28   : > { %358 = vmatpush1.msra.mxu0 %v257_v7  ;;  %1354 = vmatpush1.msra.mxu1 %v257_v7  ;;  %v265_v20 = vld [vmem:[%s2015_s1 + $0xa0] sm:$0xff]  ;;  %v243_v26 = vld [vmem:[%s1688_s14 + $0x70] sm:$0xff]  ;;  %v256_v27 = vld [vmem:[%s2015_s1 + $0x58] sm:$0xff] }
  0x29   : > { %359 = vmatprep.subr.mxu0 %v255_v8  ;;  %1347 = vmatprep.subr.mxu1 %v255_v8  ;;  %v253_v28 = vld [vmem:[%s2015_s1 + $0x40] sm:$0xff]  ;;  %v232_v29 = vld [vmem:[%s1688_s14 + $0x18] sm:$0xff]  ;;  %v250_v31 = vld [vmem:[%s2015_s1 + $0x28] sm:$0xff] }
  0x2a   : > { %360 = vmatpush1.msra.mxu0 %v254_v9  ;;  %1355 = vmatpush1.msra.mxu1 %v254_v9  ;;  %v244_v30 = vld [vmem:[%s1688_s14 + $0x78] sm:$0xff]  ;;  %v247_v32 = vld [vmem:[%s2015_s1 + $0x10] sm:$0xff]  ;;  %v233_v33 = vld [vmem:[%s1688_s14 + $0x20] sm:$0xff]  ;;  %v281_v9 = vsub.s32 2, %v272_v42 }
  0x2b   : > { %361 = vmatprep.subr.mxu0 %v252_v10  ;;  %1348 = vmatprep.subr.mxu1 %v252_v10  ;;  %v234_v34 = vld [vmem:[%s1688_s14 + $0x28] sm:$0xff]  ;;  %v235_v35 = vld [vmem:[%s1688_s14 + $0x30] sm:$0xff]  ;;  %v236_v36 = vld [vmem:[%s1688_s14 + $0x38] sm:$0xff] }
  0x2c   : > { %362 = vmatpush1.msra.mxu0 %v251_v11  ;;  %1356 = vmatpush1.msra.mxu1 %v251_v11  ;;  %v237_v37 = vld [vmem:[%s1688_s14 + $0x40] sm:$0xff]  ;;  %v238_v38 = vld [vmem:[%s1688_s14 + $0x48] sm:$0xff]  ;;  %v239_v39 = vld [vmem:[%s1688_s14 + $0x50] sm:$0xff] }
  0x2d   : > { %363 = vmatprep.subr.mxu0 %v249_v12  ;;  %1349 = vmatprep.subr.mxu1 %v249_v12  ;;  %v240_v40 = vld [vmem:[%s1688_s14 + $0x58] sm:$0xff]  ;;  %v269_v44 = vld [vmem:[%s2016_s2] sm:$0x7] }
  0x2e   : > { %364 = vmatpush1.msra.mxu0 %v248_v13  ;;  %1357 = vmatpush1.msra.mxu1 %v248_v13  ;;  %v1842_v46 = vrot.slane %v269_v44, %v273_v43  ;;  %v1844_v47 = vrot.slane %v269_v44, %v277_v45 }
  0x2f   : > { %365 = vmatprep.subr.mxu0 %v246_v14  ;;  %1350 = vmatprep.subr.mxu1 %v246_v14 }
  0x30   : > { %366 = vmatpush1.msra.mxu0 %v245_v15  ;;  %1358 = vmatpush1.msra.mxu1 %v245_v15 }
  0x31   : > { %399 = vmatprep.mubr.f32.mxu0 %v1578_v19  ;;  %471 = vmatprep.mubr.f32.mxu1 %v1578_v19 }
  0x32   : > { %1119 = vmatmul.mubr.msk.f32.vlgmr.msra.gmra.mxu0 %vm286_vm0, %v229_v16  ;;  %1131 = vmatmul.mubr.msk.f32.vlgmr.msra.gmra.mxu1 %vm286_vm0, %v1745_v17 }
  0x33   : > { %1227 = vmatprep.subr.mxu1 %v268_v18  ;;  %405 = vmatprep.mubr.f32.mxu0 %v1578_v19 }
  0x34   : > { %1228 = vmatpush3.msra.mxu1 %v268_v18  ;;  %477 = vmatprep.mubr.f32.mxu1 %v1578_v19 }
  0x35   : > { %1229 = vmatprep.subr.mxu1 %v265_v20 }
  0x36   : > { %1230 = vmatpush3.msra.mxu1 %v265_v20  ;;  %1120 = vmatmul.mubr.msk.f32.gmra.mxu0 %vm286_vm0, %v230_v21  ;;  %v1860_v20 = vrot.slane %v269_v44, %v281_v9 }
  0x37   : > { %1132 = vmatmul.mubr.msk.f32.gmra.mxu1 %vm286_vm0, %v1762_v22  ;;  %1231 = vmatprep.subr.mxu1 %v262_v23 }
  0x38   : > { %1232 = vmatpush3.msra.mxu1 %v262_v23  ;;  %411 = vmatprep.mubr.f32.mxu0 %v1578_v19 }
  0x39   : > { %1233 = vmatprep.subr.mxu1 %v259_v24  ;;  %483 = vmatprep.mubr.f32.mxu1 %v1578_v19 }
  0x3a   : > { %1234 = vmatpush3.msra.mxu1 %v259_v24  ;;  %1121 = vmatmul.mubr.msk.f32.gmra.mxu0 %vm286_vm0, %v231_v25 }
  0x3b   : > { %1133 = vmatmul.mubr.msk.f32.gmra.mxu1 %vm286_vm0, %v243_v26  ;;  %1235 = vmatprep.subr.mxu1 %v256_v27 }
  0x3c   : > { %1236 = vmatpush3.msra.mxu1 %v256_v27  ;;  %417 = vmatprep.mubr.f32.mxu0 %v1578_v19 }
  0x3d   : > { %1237 = vmatprep.subr.mxu1 %v253_v28  ;;  %489 = vmatprep.mubr.f32.mxu1 %v1578_v19 }
  0x3e   : > { %1238 = vmatpush3.msra.mxu1 %v253_v28  ;;  %1122 = vmatmul.mubr.msk.f32.gmra.mxu0 %vm286_vm0, %v232_v29 }
  0x3f   : > { %1134 = vmatmul.mubr.msk.f32.gmra.mxu1 %vm286_vm0, %v244_v30  ;;  %1239 = vmatprep.subr.mxu1 %v250_v31 }
  0x40   : > { %1240 = vmatpush3.msra.mxu1 %v250_v31  ;;  %423 = vmatprep.mubr.f32.mxu0 %v1578_v19 }
  0x41   : > { %1241 = vmatprep.subr.mxu1 %v247_v32  ;;  %1243 = vmatprep.mubr.msk.f32.mxu1 %vm286_vm0, %v229_v16 }
  0x42   : > { %1242 = vmatpush3.msra.mxu1 %v247_v32  ;;  %1123 = vmatmul.mubr.msk.f32.gmra.mxu0 %vm286_vm0, %v233_v33 }
  0x43   : > { %1244 = vmatmul.mubr.msk.f32.vlgmr.msra.gmra.mxu1 %vm286_vm0, %v230_v21  ;;  %429 = vmatprep.mubr.f32.mxu0 %v1578_v19 }
  0x44   : > { %1246 = vmatprep.mubr.msk.f32.mxu1 %vm286_vm0, %v231_v25 }
  0x46   : > { %1124 = vmatmul.mubr.msk.f32.gmra.mxu0 %vm286_vm0, %v234_v34 }
  0x47   : > { %1247 = vmatmul.mubr.msk.f32.gmra.mxu1 %vm286_vm0, %v232_v29  ;;  %435 = vmatprep.mubr.f32.mxu0 %v1578_v19 }
  0x48   : > { %1249 = vmatprep.mubr.msk.f32.mxu1 %vm286_vm0, %v233_v33 }
  0x4a   : > { %1125 = vmatmul.mubr.msk.f32.gmra.mxu0 %vm286_vm0, %v235_v35 }
  0x4b   : > { %1250 = vmatmul.mubr.msk.f32.gmra.mxu1 %vm286_vm0, %v234_v34  ;;  %441 = vmatprep.mubr.f32.mxu0 %v1578_v19 }
  0x4c   : > { %1252 = vmatprep.mubr.msk.f32.mxu1 %vm286_vm0, %v235_v35 }
  0x4e   : > { %1126 = vmatmul.mubr.msk.f32.gmra.mxu0 %vm286_vm0, %v236_v36 }
  0x4f   : > { %1253 = vmatmul.mubr.msk.f32.gmra.mxu1 %vm286_vm0, %v236_v36  ;;  %447 = vmatprep.mubr.f32.mxu0 %v1578_v19 }
  0x50   : > { %1255 = vmatprep.mubr.msk.f32.mxu1 %vm286_vm0, %v237_v37 }
  0x52   : > { %1127 = vmatmul.mubr.msk.f32.gmra.mxu0 %vm286_vm0, %v237_v37 }
  0x53   : > { %1256 = vmatmul.mubr.msk.f32.gmra.mxu1 %vm286_vm0, %v238_v38  ;;  %453 = vmatprep.mubr.f32.mxu0 %v1578_v19 }
  0x54   : > { %1258 = vmatprep.mubr.msk.f32.mxu1 %vm286_vm0, %v239_v39 }
  0x56   : > { %1128 = vmatmul.mubr.msk.f32.gmra.mxu0 %vm286_vm0, %v238_v38 }
  0x57   : > { %1259 = vmatmul.mubr.msk.f32.gmra.mxu1 %vm286_vm0, %v240_v40  ;;  %459 = vmatprep.mubr.f32.mxu0 %v1578_v19 }
  0x58   : > { %1261 = vmatprep.mubr.msk.f32.mxu1 %vm286_vm0, %v1745_v17 }
  0x5a   : > { %1129 = vmatmul.mubr.msk.f32.gmra.mxu0 %vm286_vm0, %v239_v39 }
  0x5b   : > { %1262 = vmatmul.mubr.msk.f32.gmra.mxu1 %vm286_vm0, %v1762_v22  ;;  %465 = vmatprep.mubr.f32.mxu0 %v1578_v19 }
  0x5c   : > { %1264 = vmatprep.mubr.msk.f32.mxu1 %vm286_vm0, %v243_v26 }
  0x5e   : > { %1130 = vmatmul.mubr.msk.f32.gmra.mxu0 %vm286_vm0, %v240_v40 }
  0x5f   : > { %1265 = vmatmul.mubr.msk.f32.gmra.mxu1 %vm286_vm0, %v244_v30 }
  0xf2   : > { %v401_v48 = vpop.f32.mrf.mxu0  ;;  %v473_v49 = vpop.f32.mrf.mxu1 }
  0xf3   : > { %v402_v50 = vadd.f32 %v401_v48, %v1842_v46  ;;  %v474_v51 = vadd.f32 %v473_v49, %v1842_v46 }
  0xf4   : > { %v403_v52 = vpop.f32.mrf.mxu0  ;;  %v475_v53 = vpop.f32.mrf.mxu1 }
  0xf5   : > { %v641_v54 = vmul.f32 0.088388346, %v402_v50  ;;  %v653_v55 = vmul.f32 0.088388346, %v474_v51  ;;  %v404_v56 = vadd.f32 %v403_v52, %v1844_v47  ;;  %v476_v57 = vadd.f32 %v475_v53, %v1844_v47 }
  0xf6   : > { %v407_v58 = vpop.f32.mrf.mxu0 }
  0xf7   : > { %657 = vst [vmem:[#allocation2] sm:$0xff] %v641_v54  ;;  %669 = vst [vmem:[#allocation2 + $0x60] sm:$0xff] %v653_v55  ;;  %v408_v59 = vadd.f32 %v407_v58, %v1842_v46  ;;  %v479_v60 = vpop.f32.mrf.mxu1 }
  0xf8   : > { %673 = vst [vmem:[#allocation3 + $0x30] sm:$0xff] %v404_v56  ;;  %685 = vst [vmem:[#allocation3 + $0x60] sm:$0xff] %v476_v57  ;;  %v480_v61 = vadd.f32 %v479_v60, %v1842_v46  ;;  %v409_v62 = vpop.f32.mrf.mxu0 }
  0xf9   : > { %v642_v63 = vmul.f32 0.088388346, %v408_v59  ;;  %v410_v0 = vadd.f32 %v409_v62, %v1844_v47  ;;  %v481_v1 = vpop.f32.mrf.mxu1 }
  0xfa   : > { %v654_v2 = vmul.f32 0.088388346, %v480_v61  ;;  %v482_v3 = vadd.f32 %v481_v1, %v1844_v47  ;;  %v413_v4 = vpop.f32.mrf.mxu0 }
  0xfb   : > { %658 = vst [vmem:[#allocation2 + $0x8] sm:$0xff] %v642_v63  ;;  %674 = vst [vmem:[#allocation3] sm:$0xff] %v410_v0  ;;  %v414_v5 = vadd.f32 %v413_v4, %v1842_v46  ;;  %v485_v6 = vpop.f32.mrf.mxu1 }
  0xfc   : > { %670 = vst [vmem:[#allocation2 + $0x68] sm:$0xff] %v654_v2  ;;  %686 = vst [vmem:[#allocation3 + $0x70] sm:$0xff] %v482_v3  ;;  %v486_v7 = vadd.f32 %v485_v6, %v1842_v46  ;;  %v415_v8 = vpop.f32.mrf.mxu0 }
  0xfd   : > { %v643_v10 = vmul.f32 0.088388346, %v414_v5  ;;  %v416_v11 = vadd.f32 %v415_v8, %v1844_v47  ;;  %v487_v12 = vpop.f32.mrf.mxu1 }
  0xfe   : > { %v655_v13 = vmul.f32 0.088388346, %v486_v7  ;;  %v488_v14 = vadd.f32 %v487_v12, %v1844_v47  ;;  %v419_v15 = vpop.f32.mrf.mxu0 }
  0xff   : > { %659 = vst [vmem:[#allocation2 + $0x10] sm:$0xff] %v643_v10  ;;  %675 = vst [vmem:[#allocation3 + $0x58] sm:$0xff] %v416_v11  ;;  %v420_v16 = vadd.f32 %v419_v15, %v1842_v46  ;;  %v491_v17 = vpop.f32.mrf.mxu1 }
 0x100   : > { %671 = vst [vmem:[#allocation2 + $0x70] sm:$0xff] %v655_v13  ;;  %687 = vst [vmem:[#allocation3 + $0x78] sm:$0xff] %v488_v14  ;;  %v492_v18 = vadd.f32 %v491_v17, %v1842_v46  ;;  %v421_v19 = vpop.f32.mrf.mxu0 }
 0x101   : > { %v644_v21 = vmul.f32 0.088388346, %v420_v16  ;;  %v422_v22 = vadd.f32 %v421_v19, %v1844_v47  ;;  %v493_v23 = vpop.f32.mrf.mxu1 }
 0x102   : > { %v656_v24 = vmul.f32 0.088388346, %v492_v18  ;;  %v494_v25 = vadd.f32 %v493_v23, %v1844_v47  ;;  %v425_v26 = vpop.f32.mrf.mxu0 }
 0x103   : > { %660 = vst [vmem:[#allocation2 + $0x18] sm:$0xff] %v644_v21  ;;  %676 = vst [vmem:[#allocation3 + $0x18] sm:$0xff] %v422_v22  ;;  %v426_v27 = vadd.f32 %v425_v26, %v1842_v46  ;;  %v1245_v28 = vpop.f32.mrf.mxu1 }
 0x104   : > { %672 = vst [vmem:[#allocation2 + $0x78] sm:$0xff] %v656_v24  ;;  %688 = vst [vmem:[#allocation3 + $0x28] sm:$0xff] %v494_v25  ;;  %v568_v29 = vadd.f32 %v1245_v28, %v1860_v20  ;;  %v427_v30 = vpop.f32.mrf.mxu0 }
 0x105   : > { %v645_v31 = vmul.f32 0.088388346, %v426_v27  ;;  %v428_v32 = vadd.f32 %v427_v30, %v1844_v47  ;;  %v562_v33 = vpop.f32.mrf.mxu1 }
 0x106   : > { %690 = vst [vmem:[#allocation4 + $0x68] sm:$0xff] %v568_v29  ;;  %v563_v34 = vadd.f32 %v562_v33, %v1860_v20  ;;  %v431_v35 = vpop.f32.mrf.mxu0 }
 0x107   : > { %661 = vst [vmem:[#allocation2 + $0x20] sm:$0xff] %v645_v31  ;;  %677 = vst [vmem:[#allocation3 + $0x50] sm:$0xff] %v428_v32  ;;  %v432_v36 = vadd.f32 %v431_v35, %v1842_v46  ;;  %v1248_v37 = vpop.f32.mrf.mxu1 }
 0x108   : > { %689 = vst [vmem:[#allocation4 + $0x28] sm:$0xff] %v563_v34  ;;  %v578_v38 = vadd.f32 %v1248_v37, %v1860_v20  ;;  %v433_v39 = vpop.f32.mrf.mxu0 }
 0x109   : > { %v646_v40 = vmul.f32 0.088388346, %v432_v36  ;;  %v434_v41 = vadd.f32 %v433_v39, %v1844_v47  ;;  %v572_v42 = vpop.f32.mrf.mxu1 }
 0x10a   : > { %692 = vst [vmem:[#allocation4 + $0x40] sm:$0xff] %v578_v38  ;;  %v573_v43 = vadd.f32 %v572_v42, %v1860_v20  ;;  %v437_v44 = vpop.f32.mrf.mxu0 }
 0x10b   : > { %662 = vst [vmem:[#allocation2 + $0x28] sm:$0xff] %v646_v40  ;;  %678 = vst [vmem:[#allocation3 + $0x68] sm:$0xff] %v434_v41  ;;  %v438_v45 = vadd.f32 %v437_v44, %v1842_v46  ;;  %v1251_v48 = vpop.f32.mrf.mxu1 }
 0x10c   : > { %691 = vst [vmem:[#allocation4 + $0x10] sm:$0xff] %v573_v43  ;;  %v588_v49 = vadd.f32 %v1251_v48, %v1860_v20  ;;  %v439_v50 = vpop.f32.mrf.mxu0 }
 0x10d   : > { %v647_v51 = vmul.f32 0.088388346, %v438_v45  ;;  %v440_v52 = vadd.f32 %v439_v50, %v1844_v47  ;;  %v582_v53 = vpop.f32.mrf.mxu1 }
 0x10e   : > { %694 = vst [vmem:[#allocation4 + $0x30] sm:$0xff] %v588_v49  ;;  %v583_v54 = vadd.f32 %v582_v53, %v1860_v20  ;;  %v443_v55 = vpop.f32.mrf.mxu0 }
 0x10f   : > { %663 = vst [vmem:[#allocation2 + $0x30] sm:$0xff] %v647_v51  ;;  %679 = vst [vmem:[#allocation3 + $0x8] sm:$0xff] %v440_v52  ;;  %v444_v56 = vadd.f32 %v443_v55, %v1842_v46  ;;  %v1254_v57 = vpop.f32.mrf.mxu1 }
 0x110   : > { %693 = vst [vmem:[#allocation4 + $0x48] sm:$0xff] %v583_v54  ;;  %v598_v58 = vadd.f32 %v1254_v57, %v1860_v20  ;;  %v445_v59 = vpop.f32.mrf.mxu0 }
 0x111   : > { %v648_v60 = vmul.f32 0.088388346, %v444_v56  ;;  %v446_v61 = vadd.f32 %v445_v59, %v1844_v47  ;;  %v592_v62 = vpop.f32.mrf.mxu1 }
 0x112   : > { %696 = vst [vmem:[#allocation4 + $0x38] sm:$0xff] %v598_v58  ;;  %v593_v63 = vadd.f32 %v592_v62, %v1860_v20  ;;  %v449_v0 = vpop.f32.mrf.mxu0 }
 0x113   : > { %664 = vst [vmem:[#allocation2 + $0x38] sm:$0xff] %v648_v60  ;;  %680 = vst [vmem:[#allocation3 + $0x48] sm:$0xff] %v446_v61  ;;  %v450_v1 = vadd.f32 %v449_v0, %v1842_v46  ;;  %v1257_v2 = vpop.f32.mrf.mxu1 }
 0x114   : > { %695 = vst [vmem:[#allocation4 + $0x70] sm:$0xff] %v593_v63  ;;  %v608_v3 = vadd.f32 %v1257_v2, %v1860_v20  ;;  %v451_v4 = vpop.f32.mrf.mxu0 }
 0x115   : > { %v649_v5 = vmul.f32 0.088388346, %v450_v1  ;;  %v452_v6 = vadd.f32 %v451_v4, %v1844_v47  ;;  %v602_v7 = vpop.f32.mrf.mxu1 }
 0x116   : > { %698 = vst [vmem:[#allocation4 + $0x78] sm:$0xff] %v608_v3  ;;  %v603_v8 = vadd.f32 %v602_v7, %v1860_v20  ;;  %v455_v9 = vpop.f32.mrf.mxu0 }
 0x117   : > { %665 = vst [vmem:[#allocation2 + $0x40] sm:$0xff] %v649_v5  ;;  %681 = vst [vmem:[#allocation3 + $0x40] sm:$0xff] %v452_v6  ;;  %v456_v10 = vadd.f32 %v455_v9, %v1842_v46  ;;  %v1260_v11 = vpop.f32.mrf.mxu1 }
 0x118   : > { %697 = vst [vmem:[#allocation4 + $0x20] sm:$0xff] %v603_v8  ;;  %v618_v12 = vadd.f32 %v1260_v11, %v1860_v20  ;;  %v457_v13 = vpop.f32.mrf.mxu0 }
 0x119   : > { %v650_v14 = vmul.f32 0.088388346, %v456_v10  ;;  %v458_v15 = vadd.f32 %v457_v13, %v1844_v47  ;;  %v612_v16 = vpop.f32.mrf.mxu1 }
 0x11a   : > { %700 = vst [vmem:[#allocation4 + $0x58] sm:$0xff] %v618_v12  ;;  %v613_v17 = vadd.f32 %v612_v16, %v1860_v20  ;;  %v461_v18 = vpop.f32.mrf.mxu0 }
 0x11b   : > { %666 = vst [vmem:[#allocation2 + $0x48] sm:$0xff] %v650_v14  ;;  %682 = vst [vmem:[#allocation3 + $0x20] sm:$0xff] %v458_v15  ;;  %v462_v19 = vadd.f32 %v461_v18, %v1842_v46  ;;  %v1263_v21 = vpop.f32.mrf.mxu1 }
 0x11c   : > { %699 = vst [vmem:[#allocation4 + $0x18] sm:$0xff] %v613_v17  ;;  %v628_v22 = vadd.f32 %v1263_v21, %v1860_v20  ;;  %v463_v23 = vpop.f32.mrf.mxu0 }
 0x11d   : > { %v651_v24 = vmul.f32 0.088388346, %v462_v19  ;;  %v464_v25 = vadd.f32 %v463_v23, %v1844_v47  ;;  %v622_v26 = vpop.f32.mrf.mxu1 }
 0x11e   : > { %702 = vst [vmem:[#allocation4 + $0x8] sm:$0xff] %v628_v22  ;;  %v623_v27 = vadd.f32 %v622_v26, %v1860_v20  ;;  %v467_v28 = vpop.f32.mrf.mxu0 }
 0x11f   : > { %667 = vst [vmem:[#allocation2 + $0x50] sm:$0xff] %v651_v24  ;;  %683 = vst [vmem:[#allocation3 + $0x10] sm:$0xff] %v464_v25  ;;  %v468_v29 = vadd.f32 %v467_v28, %v1842_v46  ;;  %v1266_v30 = vpop.f32.mrf.mxu1 }
 0x120   : > { %701 = vst [vmem:[#allocation4] sm:$0xff] %v623_v27  ;;  %v638_v31 = vadd.f32 %v1266_v30, %v1860_v20  ;;  %v469_v32 = vpop.f32.mrf.mxu0 }
 0x121   : > { %v652_v33 = vmul.f32 0.088388346, %v468_v29  ;;  %v470_v34 = vadd.f32 %v469_v32, %v1844_v47  ;;  %v632_v35 = vpop.f32.mrf.mxu1 }
 0x122   : > { %704 = vst [vmem:[#allocation4 + $0x50] sm:$0xff] %v638_v31  ;;  %v633_v36 = vadd.f32 %v632_v35, %v1860_v20 }
 0x123   : > { %668 = vst [vmem:[#allocation2 + $0x58] sm:$0xff] %v652_v33  ;;  %684 = vst [vmem:[#allocation3 + $0x38] sm:$0xff] %v470_v34 }
 0x124   : > { %703 = vst [vmem:[#allocation4 + $0x60] sm:$0xff] %v633_v36 }
 0x125 PF: > { %v726_v37 = vld [vmem:[#allocation3 + $0x28] sm:$0xff]  ;;  %v725_v38 = vld [vmem:[#allocation3 + $0x78] sm:$0xff]  ;;  %s1151_s13 = sshll.u32 %s1560_s18, 5  ;;  %v724_v46 = vld [vmem:[#allocation3 + $0x70] sm:$0xff]  ;;  %s1154_s30 = sshll.u32 %s1560_s18, 2 }
 0x126   : > { %1267 = vmatprep.subr.mxu0 %v726_v37  ;;  %s1897_s27 = scalar_lea.vmem [#allocation2], %s1151_s13  ;;  %v723_v20 = vld [vmem:[#allocation3 + $0x60] sm:$0xff]  ;;  %v721_v40 = vld [vmem:[#allocation3 + $0x10] sm:$0xff]  ;;  %v718_v43 = vld [vmem:[#allocation3 + $0x48] sm:$0xff]  ;;  %s1155_s26 = sshll.u32 %s1564_s19, 4 }
 0x127   : > { %1268 = vmatpush3.xpose.msra.mxu0 %v726_v37  ;;  %v720_v41 = vld [vmem:[#allocation3 + $0x20] sm:$0xff]  ;;  %v717_v44 = vld [vmem:[#allocation3 + $0x8] sm:$0xff]  ;;  %v715_v48 = vld [vmem:[#allocation3 + $0x50] sm:$0xff]  ;;  %s1909_s5 = sadd.s32 %s1155_s26, %s1154_s30  ;;  %s996_s14 = sshll.u32 %s1692_s24, 4  ;;  %s1920_s14 = int_to_ptr.vmem [resolvable:$true] %s996_s14 }
 0x128   : > { %1269 = vmatprep.subr.mxu0 %v725_v38  ;;  %v719_v42 = vld [vmem:[#allocation3 + $0x40] sm:$0xff]  ;;  %v716_v45 = vld [vmem:[#allocation3 + $0x68] sm:$0xff]  ;;  %v714_v49 = vld [vmem:[#allocation3 + $0x18] sm:$0xff]  ;;  %s1156_s6 = sshll.u32 %s1909_s5, 7  ;;  %s963_s12 = scalar_lea.sflag [#allocation8], %s1680_s8 }
 0x129   : > { %v713_v50 = vld [vmem:[#allocation3 + $0x58] sm:$0xff]  ;;  %v712_v51 = vld [vmem:[#allocation3] sm:$0xff]  ;;  %v711_v52 = vld [vmem:[#allocation3 + $0x30] sm:$0xff]  ;;  %s1917_s9 = scalar_lea.hbm %s2018_s4, %s1156_s6  ;;  %s1454_s18 = scalar_lea.vmem %s1920_s14, 512 }
 0x12a   : > { %v707_v47 = vld [vmem:[%s1897_s27] sm:$0xff]  ;;  %v722_v39 = vld [vmem:[#allocation3 + $0x38] sm:$0xff]  ;;  %v708_v53 = vld [vmem:[%s1897_s27 + $0x8] sm:$0xff]  ;;  %p1455_p0 = scmp.ne.s32.totalorder %s1920_s14, %s1454_s18  ;;  %s1579_s19 = smov [#allocation7]  }
 0x12b   : > { %1270 = vmatpush3.xpose.msra.mxu0 %v725_v38  ;;  %1299 = vmatprep.mubr.f32.mxu0 %v707_v47  ;;  %v709_v54 = vld [vmem:[%s1897_s27 + $0x10] sm:$0xff]  ;;  %v710_v55 = vld [vmem:[%s1897_s27 + $0x18] sm:$0xff]  ;;  %v862_v61 = vld [vmem:[#allocation4 + $0x60] sm:$0xff]  ;;  %s1458_s13 = sshll.u32 %s1579_s19, 4  ;;  %s1459_s13 = int_to_ptr.vmem [resolvable:$false] %s1458_s13 }
 0x12c   : > { %1271 = vmatprep.subr.mxu0 %v724_v46  ;;  %v863_v60 = vld [vmem:[#allocation4 + $0x50] sm:$0xff]  ;;  %v861_v62 = vld [vmem:[#allocation4 + $0x8] sm:$0xff]  ;;  %v860_v63 = vld [vmem:[#allocation4] sm:$0xff]  ;;  %p1456_p1 = pnand %p1455_p0, %p1659_p3  ;;  %s1460_s27 = scalar_lea.vmem %s1459_s13, 1024 }
 0x12d   : > { %1305 = vmatprep.subr.mxu1 %v863_v60  ;;  %v859_v0 = vld [vmem:[#allocation4 + $0x58] sm:$0xff]  ;;  %v856_v19 = vld [vmem:[#allocation4 + $0x20] sm:$0xff]  ;;  %v854_v22 = vld [vmem:[#allocation4 + $0x70] sm:$0xff]  ;;  %p1461_p4 = scmp.lt.s32.totalorder %s1920_s14, %s1459_s13  ;;  %p1462_p5 = scmp.lt.s32.totalorder %s1460_s27, %s1454_s18 }
 0x12e   : > { %1306 = vmatpush3.msra.mxu1 %v863_v60  ;;  %v858_v1 = vld [vmem:[#allocation4 + $0x18] sm:$0xff]  ;;  %v853_v23 = vld [vmem:[#allocation4 + $0x30] sm:$0xff]  ;;  %v852_v24 = vld [vmem:[#allocation4 + $0x48] sm:$0xff]  ;;  %p1457_p2 = pneg %p1456_p1 }
 0x12f   : > { %1272 = vmatpush3.xpose.msra.mxu0 %v724_v46  ;;  %1307 = vmatprep.subr.mxu1 %v862_v61  ;;  %v857_v18 = vld [vmem:[#allocation4 + $0x78] sm:$0xff]  ;;  %v851_v25 = vld [vmem:[#allocation4 + $0x40] sm:$0xff]  ;;  %v850_v26 = vld [vmem:[#allocation4 + $0x10] sm:$0xff]  ;;  %p1463_p6 = por %p1462_p5, %p1461_p4 }
 0x130   : > { %1273 = vmatprep.subr.mxu0 %v723_v20  ;;  %1308 = vmatpush3.msra.mxu1 %v862_v61  ;;  %v855_v21 = vld [vmem:[#allocation4 + $0x38] sm:$0xff]  ;;  %v849_v27 = vld [vmem:[#allocation4 + $0x68] sm:$0xff] }
 0x131   : > { %1309 = vmatprep.subr.mxu1 %v861_v62  ;;  %v848_v28 = vld [vmem:[#allocation4 + $0x28] sm:$0xff]  ;;  %p1464_p7 = pnand %p1463_p6, %p1457_p2 }
 0x132   : > { %1310 = vmatpush3.msra.mxu1 %v861_v62 }
 0x133   : > { %1274 = vmatpush3.xpose.msra.mxu0 %v723_v20  ;;  %1311 = vmatprep.subr.mxu1 %v860_v63 }
 0x134   : > { %1275 = vmatprep.subr.mxu0 %v722_v39  ;;  %1312 = vmatpush3.msra.mxu1 %v860_v63 }
 0x135   : > { %1313 = vmatprep.subr.mxu1 %v859_v0 }
 0x136   : > { %1314 = vmatpush3.msra.mxu1 %v859_v0 }
 0x137   : > { %1276 = vmatpush3.xpose.msra.mxu0 %v722_v39  ;;  %1315 = vmatprep.subr.mxu1 %v858_v1 }
 0x138   : > { %1277 = vmatprep.subr.mxu0 %v721_v40  ;;  %1316 = vmatpush3.msra.mxu1 %v858_v1 }
 0x139   : > { %1317 = vmatprep.subr.mxu1 %v857_v18 }
 0x13a   : > { %1318 = vmatpush3.msra.mxu1 %v857_v18 }
 0x13b   : > { %1278 = vmatpush3.xpose.msra.mxu0 %v721_v40  ;;  %1319 = vmatprep.subr.mxu1 %v856_v19 }
 0x13c   : > { %1279 = vmatprep.subr.mxu0 %v720_v41  ;;  %1320 = vmatpush3.msra.mxu1 %v856_v19 }
 0x13d   : > { %1321 = vmatprep.subr.mxu1 %v855_v21 }
 0x13e   : > { %1322 = vmatpush3.msra.mxu1 %v855_v21 }
 0x13f   : > { %1280 = vmatpush3.xpose.msra.mxu0 %v720_v41  ;;  %1323 = vmatprep.subr.mxu1 %v854_v22 }
 0x140   : > { %1281 = vmatprep.subr.mxu0 %v719_v42  ;;  %1324 = vmatpush3.msra.mxu1 %v854_v22 }
 0x141   : > { %1325 = vmatprep.subr.mxu1 %v853_v23 }
 0x142   : > { %1326 = vmatpush3.msra.mxu1 %v853_v23 }
 0x143   : > { %1282 = vmatpush3.xpose.msra.mxu0 %v719_v42  ;;  %1327 = vmatprep.subr.mxu1 %v852_v24 }
 0x144   : > { %1283 = vmatprep.subr.mxu0 %v718_v43  ;;  %1328 = vmatpush3.msra.mxu1 %v852_v24 }
 0x145   : > { %1329 = vmatprep.subr.mxu1 %v851_v25 }
 0x146   : > { %1330 = vmatpush3.msra.mxu1 %v851_v25 }
 0x147   : > { %1284 = vmatpush3.xpose.msra.mxu0 %v718_v43  ;;  %1331 = vmatprep.subr.mxu1 %v850_v26 }
 0x148   : > { %1285 = vmatprep.subr.mxu0 %v717_v44  ;;  %1332 = vmatpush3.msra.mxu1 %v850_v26 }
 0x149   : > { %1333 = vmatprep.subr.mxu1 %v849_v27 }
 0x14a   : > { %1334 = vmatpush3.msra.mxu1 %v849_v27 }
 0x14b   : > { %1286 = vmatpush3.xpose.msra.mxu0 %v717_v44  ;;  %1335 = vmatprep.subr.mxu1 %v848_v28 }
 0x14c   : > { %1287 = vmatprep.subr.mxu0 %v716_v45  ;;  %1336 = vmatpush3.msra.mxu1 %v848_v28 }
 0x14f   : > { %1288 = vmatpush3.xpose.msra.mxu0 %v716_v45 }
 0x150   : > { %1289 = vmatprep.subr.mxu0 %v715_v48 }
 0x153   : > { %1290 = vmatpush3.xpose.msra.mxu0 %v715_v48 }
 0x154   : > { %1291 = vmatprep.subr.mxu0 %v714_v49 }
 0x157   : > { %1292 = vmatpush3.xpose.msra.mxu0 %v714_v49 }
 0x158   : > { %1293 = vmatprep.subr.mxu0 %v713_v50 }
 0x15b   : > { %1294 = vmatpush3.xpose.msra.mxu0 %v713_v50 }
 0x15c   : > { %1295 = vmatprep.subr.mxu0 %v712_v51 }
 0x15f   : > { %1296 = vmatpush3.xpose.msra.mxu0 %v712_v51 }
 0x160   : > { %1297 = vmatprep.subr.mxu0 %v711_v52 }
 0x163   : > { %1298 = vmatpush3.xpose.msra.mxu0 %v711_v52 }
 0x166   : > { %1300 = vmatmul.mubr.f32.vlgmr.msra.gmra.mxu0 %v708_v53 }
 0x167   : > { %1302 = vmatprep.mubr.f32.mxu0 %v709_v54 }
 0x16a   : > { %1303 = vmatmul.mubr.f32.gmra.mxu0 %v710_v55 }
 0x226   : > { %v1301_v56 = vpop.f32.mrf.mxu0 }
 0x228   : > { %v793_v57 = vpop.f32.mrf.mxu0 }
 0x229   : > { %812 = vmax.xlane.f32.xlu0 %v793_v57 }
 0x22a   : > { %v1304_v58 = vpop.f32.mrf.mxu0 }
 0x22c   : > { %v803_v59 = vpop.f32.mrf.mxu0 }
 0x22d   : > { %814 = vmax.xlane.f32.xlu0 %v1301_v56  ;;  %816 = vmax.xlane.f32.xlu1 %v803_v59 }
 0x231   : > { %818 = vmax.xlane.f32.xlu1 %v1304_v58 }
 0x2b2   : > { %v813_v2 = vpop.xlane.xlu0 %812 }
 0x2b3   : > { %v820_v3 = vsub.f32 %v793_v57, %v813_v2 }
 0x2b5   : > { %v824_v4 = vmul.f32 1.442695, %v820_v3 }
 0x2b6   : > { %v815_v5 = vpop.xlane.xlu0 %814  ;;  %v817_v6 = vpop.xlane.xlu1 %816 }
 0x2b7   : > { %1438 = vpow2.f32 %v824_v4  ;;  %v821_v7 = vsub.f32 %v1301_v56, %v815_v5  ;;  %v822_v8 = vsub.f32 %v803_v59, %v817_v6 }
 0x2b9   : > { %v826_v9 = vmul.f32 1.442695, %v821_v7  ;;  %v828_v10 = vmul.f32 1.442695, %v822_v8 }
 0x2ba   : > { %v819_v11 = vpop.xlane.xlu1 %818 }
 0x2bb   : > { %1440 = vpow2.f32 %v826_v9  ;;  %v823_v12 = vsub.f32 %v1304_v58, %v819_v11 }
 0x2bc   : > { %1442 = vpow2.f32 %v828_v10 }
 0x2bd   : > { %v830_v13 = vmul.f32 1.442695, %v823_v12 }
 0x2bf   : > { %1444 = vpow2.f32 %v830_v13 }
 0x2c4   : > { %v1439_v14 = vpop.eup %1438 }
 0x2c5   : > { %832 = vadd.xlane.f32.xlu0 %v1439_v14 }
 0x2c8   : > { %v1441_v15 = vpop.eup %1440 }
 0x2c9   : > { %v1443_v16 = vpop.eup %1442  ;;  %834 = vadd.xlane.f32.xlu1 %v1441_v15 }
 0x2ca   : > { %836 = vadd.xlane.f32.xlu0 %v1443_v16 }
 0x2cc   : > { %v1445_v17 = vpop.eup %1444 }
 0x2cd   : > { %838 = vadd.xlane.f32.xlu1 %v1445_v17 }
 0x34e   : > { %v833_v29 = vpop.xlane.xlu0 %832 }
 0x34f   : > { %1446 = vrcp.f32 %v833_v29 }
 0x352   : > { %v835_v30 = vpop.xlane.xlu1 %834 }
 0x353   : > { %v837_v31 = vpop.xlane.xlu0 %836  ;;  %1448 = vrcp.f32 %v835_v30 }
 0x354   : > { %1450 = vrcp.f32 %v837_v31 }
 0x356   : > { %v839_v32 = vpop.xlane.xlu1 %838 }
 0x357   : > { %1452 = vrcp.f32 %v839_v32 }
 0x35c   : > { %v1447_v33 = vpop.eup %1446 }
 0x35d   : > { %v844_v34 = vmul.f32 %v1447_v33, %v1439_v14 }
 0x35f   : > { %1337 = vmatprep.mubr.f32.mxu1 %v844_v34  ;;  %953 = vst [vmem:[%s1692_s24] sm:$0xff] %v844_v34 }
 0x360   : > { %v1449_v35 = vpop.eup %1448 }
 0x361   : > { %v1451_v36 = vpop.eup %1450  ;;  %v845_v37 = vmul.f32 %v1449_v35, %v1441_v15 }
 0x362   : > { %v846_v38 = vmul.f32 %v1451_v36, %v1443_v16 }
 0x363   : > { %1338 = vmatmul.mubr.f32.vlgmr.msra.gmra.mxu1 %v845_v37  ;;  %954 = vst [vmem:[%s1692_s24 + $0x8] sm:$0xff] %v845_v37 }
 0x364   : > { %v1453_v46 = vpop.eup %1452  ;;  %1340 = vmatprep.mubr.f32.mxu1 %v846_v38  ;;  %955 = vst [vmem:[%s1692_s24 + $0x10] sm:$0xff] %v846_v38 }
 0x365   : > { %v847_v47 = vmul.f32 %v1453_v46, %v1445_v17 }
 0x367   : > { %1341 = vmatmul.mubr.f32.gmra.mxu1 %v847_v47  ;;  %956 = vst [vmem:[%s1692_s24 + $0x18] sm:$0xff] %v847_v47 }
 0x368   : > { %1467 = shalt.err (!%p1464_p7)
}
 0x369   : > { %s1468_s24 = scalar_lea.hbm %s1917_s9, 512  ;;  %s1472_s10 = scalar_lea.hbm %s2018_s4, 4096 }
 0x36a   : > { %p1469_p9 = scmp.ne.s32.totalorder %s1917_s9, %s1468_s24  ;;  %p1473_p12 = scmp.lt.s32.totalorder %s1917_s9, %s2018_s4 }
 0x36b   : > { %p1474_p13 = scmp.lt.s32.totalorder %s1472_s10, %s1468_s24 }
 0x36c   : > { %p1470_p10 = pnand %p1469_p9, %p1659_p3 }
 0x36d   : > { %p1475_p0 = por %p1474_p13, %p1473_p12 }
 0x36e   : > { %p1471_p11 = pneg %p1470_p10 }
 0x370   : > { %p1476_p1 = pnand %p1475_p0, %p1471_p11 }
 0x372   : > { %1479 = shalt.err (!%p1476_p1)
}
 0x373   : > { %s1580_s18 = smov 128   ;;  %s1581_s13 = smov 8  }
 0x374   : > { %1360 = dma.vmem_to_hbm [thread:$0]  (%p1659_p3), %s1920_s14, 512, %s1917_s9, %s963_s12, %s1580_s18, %s1580_s18, %s1581_s13  }
 0x375   : > { %s978_s27 = sshll.u32 %s1690_s23, 4  ;;  %s1957_s26 = scalar_lea.hbm %s2017_s3, %s1156_s6  ;;  %s1959_s27 = int_to_ptr.vmem [resolvable:$true] %s978_s27 }
 0x376   : > { %s958_s9 = scalar_lea.sflag [#allocation6], %s1680_s8  ;;  %s1480_s14 = scalar_lea.vmem %s1959_s27, 512 }
 0x377   : > { %p1481_p2 = scmp.ne.s32.totalorder %s1959_s27, %s1480_s14  ;;  %s1582_s12 = smov [#allocation5]  }
 0x378   : > { %s1484_s5 = sshll.u32 %s1582_s12, 4  ;;  %s1485_s5 = int_to_ptr.vmem [resolvable:$false] %s1484_s5 }
 0x379   : > { %p1482_p4 = pnand %p1481_p2, %p1659_p3  ;;  %s1486_s10 = scalar_lea.vmem %s1485_s5, 1024 }
 0x37a   : > { %p1487_p6 = scmp.lt.s32.totalorder %s1959_s27, %s1485_s5  ;;  %p1488_p7 = scmp.lt.s32.totalorder %s1486_s10, %s1480_s14 }
 0x37b   : > { %p1483_p5 = pneg %p1482_p4 }
 0x37c   : > { %p1489_p9 = por %p1488_p7, %p1487_p6 }
 0x37e   : > { %p1490_p10 = pnand %p1489_p9, %p1483_p5 }
 0x423   : > { %v1339_v20 = vpop.f32.mrf.mxu1 }
 0x424   : > { %950 = vst [vmem:[%s1690_s23 + $0x8] sm:$0xff] %v1339_v20 }
 0x425   : > { %v930_v39 = vpop.f32.mrf.mxu1 }
 0x426   : > { %949 = vst [vmem:[%s1690_s23] sm:$0xff] %v930_v39 }
 0x427   : > { %v1342_v40 = vpop.f32.mrf.mxu1 }
 0x428   : > { %952 = vst [vmem:[%s1690_s23 + $0x18] sm:$0xff] %v1342_v40 }
 0x429   : > { %v940_v41 = vpop.f32.mrf.mxu1 }
 0x42a   : > { %951 = vst [vmem:[%s1690_s23 + $0x10] sm:$0xff] %v940_v41 }
 0x42b   : > { %1493 = shalt.err (!%p1490_p10)
}
 0x42c   : > { %s1494_s23 = scalar_lea.hbm %s1957_s26, 512  ;;  %s1498_s11 = scalar_lea.hbm %s2017_s3, 4096 }
 0x42d   : > { %p1495_p11 = scmp.ne.s32.totalorder %s1957_s26, %s1494_s23  ;;  %p1499_p0 = scmp.lt.s32.totalorder %s1957_s26, %s2017_s3 }
 0x42e   : > { %p1500_p1 = scmp.lt.s32.totalorder %s1498_s11, %s1494_s23 }
 0x42f   : > { %p1496_p12 = pnand %p1495_p11, %p1659_p3 }
 0x430   : > { %p1501_p2 = por %p1500_p1, %p1499_p0 }
 0x431   : > { %p1497_p13 = pneg %p1496_p12 }
 0x433   : > { %p1502_p4 = pnand %p1501_p2, %p1497_p13 }
 0x435   : > { %1505 = shalt.err (!%p1502_p4)
}
 0x436   : > { %1359 = dma.vmem_to_hbm [thread:$0]  (%p1659_p3), %s1959_s27, 512, %s1957_s26, %s958_s9, %s1580_s18, %s1580_s18, %s1581_s13  }
 0x437 PF: > { %p1370_p5 = scmp.ge.s32.totalorder %s1576_s22, 2  ;;  %s1011_s30 = sand.u32 1, %s1548_s15  }
 0x438   : > { %s1012_s14 = scalar_lea.sflag [#allocation6], %s1011_s30 }
 0x439   : > { %p1364_p6 = pnand %p1370_p5, %p1668_p8 }
 0x43b   : > { %p1365_p7 = pneg %p1364_p6 }
 0x43d   : > { %1539 = dma.done.wait (%p1365_p7), %s1012_s14, 512  }
 0x43e   : > { %1541 = vsyncadd (%p1365_p7), %s1012_s14, 4294966784  ;;  %s1021_s12 = scalar_lea.sflag [#allocation8], %s1011_s30 }
 0x43f   : > { %1543 = dma.done.wait (%p1365_p7), %s1021_s12, 512  }
 0x440   : > { %1545 = vsyncadd (%p1365_p7), %s1021_s12, 4294966784  ;;  %s21_s22 = sadd.s32 1, %s1576_s22   ;;  %s2023_s28 = sld [smem:[#allocation11_spill]] }
 0x441   : > { %p18_p9 = scmp.ge.s32.totalorder %s21_s22, 10   ;;  %s2024_s15 = smov %s1552_s16 }
 0x442   : > { %s2025_s16 = smov %s1556_s17  ;;  %s2026_s17 = smov %s1677_s7 }
 0x443   : > { %s2027_s18 = smov %s1568_s20  ;;  %s2028_s19 = smov %s1572_s21 }
 0x444   : > { %s2029_s20 = smov %s2032_s25  ;;  %20 = sbr.rel (!%p18_p9) target bundleno = 7 (0x7), region = 89 }
 0x446   : > { %s2030_s21 = smov %s2023_s28 }
 0x449   :  { %1026 = vsyncpa [#allocation6], 1 }
 0x44a   :  { %1028 = vsyncpa [#allocation6 + $0x1], 1 }
 0x44b   :  { %1029 = vsyncpa [#allocation8], 1 }
 0x44c   :  { %1031 = vsyncpa [#allocation8 + $0x1], 1 }

</bundles_post_ra>
